<compile_context>
chip_gen: v7x
topology: tpu7x:2x2x1
jax: 0.10.0
libtpu: 0.0.40
codegen_flags: <defaults>
</compile_context>

<pallas_src>
import jax
import jax.numpy as jnp
from jax.experimental import pallas as pl
from jax.experimental.pallas import tpu as pltpu

# -------- logical dims (match the PyTorch Net layers) --------
B, C, H, W = 8, 1, 8, 8          # small NCHW test batch
D_IN = C * H * W                 # 64
D_HIDDEN = 32
D_OUT = 10

# -------- lane-dense padded dims used inside the kernel --------
D_HIDDEN_PAD = 128
D_OUT_PAD = 128
_NEG = -1e30                     # effectively -inf for padded logit lanes (avoids inf arith)


def _round_up(n, m):
    return ((n + m - 1) // m) * m


def _mlp_kernel(x_ref, w1_ref, b1_ref, w2_ref, b2_ref, w3_ref, b3_ref, o_ref):
    """Fused MLP forward: 3 matmuls (bf16 operands, f32 acc) + ReLU + log_softmax."""
    x = x_ref[...]                                                    # (bm, D_IN) bf16

    # fc1 + relu
    h1 = jnp.dot(x, w1_ref[...], preferred_element_type=jnp.float32) + b1_ref[...]
    h1 = jnp.maximum(h1, 0.0)

    # fc2 + relu
    h2 = jnp.dot(h1.astype(jnp.bfloat16), w2_ref[...],
                 preferred_element_type=jnp.float32) + b2_ref[...]
    h2 = jnp.maximum(h2, 0.0)

    # fc3 (padded logit lanes get a ~-inf bias -> exp underflows to 0 below)
    logits = jnp.dot(h2.astype(jnp.bfloat16), w3_ref[...],
                     preferred_element_type=jnp.float32) + b3_ref[...]

    # numerically stable log_softmax over the lane-dense (128-wide) last dim
    m = jnp.max(logits, axis=-1, keepdims=True)
    z = logits - m
    lse = jnp.log(jnp.sum(jnp.exp(z), axis=-1, keepdims=True))
    o_ref[...] = (z - lse).astype(o_ref.dtype)


def _pad_params(params):
    """Pad logical (in,out)-layout params to lane-dense 128-wide kernel params."""
    w1, b1, w2, b2, w3, b3 = params
    w1p = jnp.zeros((D_IN, D_HIDDEN_PAD), jnp.bfloat16).at[:, :D_HIDDEN].set(
        w1.astype(jnp.bfloat16))
    b1p = jnp.zeros((1, D_HIDDEN_PAD), jnp.float32).at[:, :D_HIDDEN].set(b1)
    w2p = jnp.zeros((D_HIDDEN_PAD, D_HIDDEN_PAD), jnp.bfloat16).at[
        :D_HIDDEN, :D_HIDDEN].set(w2.astype(jnp.bfloat16))
    b2p = jnp.zeros((1, D_HIDDEN_PAD), jnp.float32).at[:, :D_HIDDEN].set(b2)
    w3p = jnp.zeros((D_HIDDEN_PAD, D_OUT_PAD), jnp.bfloat16).at[
        :D_HIDDEN, :D_OUT].set(w3.astype(jnp.bfloat16))
    b3p = jnp.full((1, D_OUT_PAD), _NEG, jnp.float32).at[:, :D_OUT].set(b3)
    return w1p, b1p, w2p, b2p, w3p, b3p


def mlp_forward(x_nchw, params, *, max_bm=512):
    """x_nchw: (B, C, H, W) float32. Returns (B, D_OUT) float32 log-probs."""
    w1p, b1p, w2p, b2p, w3p, b3p = _pad_params(params)

    x2d = x_nchw.reshape(-1, D_IN)                      # x.view(-1, d_in)
    batch = x2d.shape[0]

    # Large batch tiles amortize per-step pipeline overhead; cap at the
    # 8-rounded batch so tiny test batches still work.  With real batches the
    # grid stays >= 2 so v7x can shard the parallel axis across both TCs.
    bm = min(max_bm, _round_up(batch, 8))
    batch_p = _round_up(batch, bm)
    if batch_p != batch:
        x2d = jnp.pad(x2d, ((0, batch_p - batch), (0, 0)))
    x2d = x2d.astype(jnp.bfloat16)

    grid = (batch_p // bm,)

    in_specs = [
        pl.BlockSpec((bm, D_IN), lambda i: (i, 0)),
        # weights / biases: whole-array blocks, constant index_map -> fetched once
        pl.BlockSpec((D_IN, D_HIDDEN_PAD), lambda i: (0, 0)),
        pl.BlockSpec((1, D_HIDDEN_PAD), lambda i: (0, 0)),
        pl.BlockSpec((D_HIDDEN_PAD, D_HIDDEN_PAD), lambda i: (0, 0)),
        pl.BlockSpec((1, D_HIDDEN_PAD), lambda i: (0, 0)),
        pl.BlockSpec((D_HIDDEN_PAD, D_OUT_PAD), lambda i: (0, 0)),
        pl.BlockSpec((1, D_OUT_PAD), lambda i: (0, 0)),
    ]
    out_spec = pl.BlockSpec((bm, D_OUT_PAD), lambda i: (i, 0))

    flops = 2 * batch_p * (D_IN * D_HIDDEN_PAD
                           + D_HIDDEN_PAD * D_HIDDEN_PAD
                           + D_HIDDEN_PAD * D_OUT_PAD)
    bytes_accessed = (int(x2d.size) * 2                     # bf16 activations in
                      + batch_p * D_OUT_PAD * 4             # f32 log-probs out
                      + (int(w1p.size) + int(w2p.size) + int(w3p.size)) * 2
                      + (int(b1p.size) + int(b2p.size) + int(b3p.size)) * 4)
    cost = pl.CostEstimate(flops=flops,
                           transcendentals=batch_p * (D_OUT_PAD + 1),
                           bytes_accessed=bytes_accessed)

    out_padded = pl.pallas_call(
        _mlp_kernel,
        out_shape=jax.ShapeDtypeStruct((batch_p, D_OUT_PAD), jnp.float32),
        grid_spec=pl.GridSpec(
            grid=grid,
            in_specs=in_specs,
            out_specs=out_spec,
        ),
        compiler_params=pltpu.CompilerParams(
            dimension_semantics=("parallel",),
        ),
        cost_estimate=cost,
    )(x2d, w1p, b1p, w2p, b2p, w3p, b3p)

    # drop padded rows and padded logit lanes
    return out_padded[:batch, :D_OUT]


def init_params(key):
    """Deterministic parameter init (shapes match the nn.Linear layers of Net)."""
    k1, k2, k3, k4, k5, k6 = jax.random.split(key, 6)
    # Weights stored as (in, out) == transpose of PyTorch's (out, in) layout.
    w1 = jax.random.normal(k1, (D_IN, D_HIDDEN), jnp.float32) * 0.05
    b1 = jax.random.normal(k2, (1, D_HIDDEN), jnp.float32) * 0.05
    w2 = jax.random.normal(k3, (D_HIDDEN, D_HIDDEN), jnp.float32) * 0.05
    b2 = jax.random.normal(k4, (1, D_HIDDEN), jnp.float32) * 0.05
    w3 = jax.random.normal(k5, (D_HIDDEN, D_OUT), jnp.float32) * 0.05
    b3 = jax.random.normal(k6, (1, D_OUT), jnp.float32) * 0.05
    return (w1, b1, w2, b2, w3, b3)


def _reference(x_nchw, params):
    """Pure-JAX reference using the same bf16-matmul / f32-elementwise recipe."""
    w1, b1, w2, b2, w3, b3 = params
    x = x_nchw.reshape(-1, D_IN).astype(jnp.bfloat16)
    h1 = jnp.maximum(
        jnp.dot(x, w1.astype(jnp.bfloat16), preferred_element_type=jnp.float32) + b1, 0.0)
    h2 = jnp.maximum(
        jnp.dot(h1.astype(jnp.bfloat16), w2.astype(jnp.bfloat16),
                preferred_element_type=jnp.float32) + b2, 0.0)
    logits = jnp.dot(h2.astype(jnp.bfloat16), w3.astype(jnp.bfloat16),
                     preferred_element_type=jnp.float32) + b3
    return jax.nn.log_softmax(logits, axis=-1)


if __name__ == "__main__":
    key = jax.random.PRNGKey(0)
    kx, kp = jax.random.split(key)

    x = jax.random.normal(kx, (B, C, H, W), jnp.float32)   # NCHW like PyTorch
    params = init_params(kp)

    out = mlp_forward(x, params)
    out = jax.block_until_ready(out)

    ref = _reference(x, params)
    assert out.shape == (B, D_OUT)
    assert jnp.allclose(out, ref, atol=1e-4, rtol=1e-4), "mismatch vs JAX reference"

    print("KERNEL_OK")
</pallas_src>

<mosaic_0001>
module attributes {stable_mosaic.version = 11 : i64} {
  func.func @_mlp_kernel(%arg0: i32, %arg1: memref<8x64xbf16, #tpu.memory_space<vmem>>, %arg2: memref<64x128xbf16, #tpu.memory_space<vmem>>, %arg3: memref<1x128xf32, #tpu.memory_space<vmem>>, %arg4: memref<128x128xbf16, #tpu.memory_space<vmem>>, %arg5: memref<1x128xf32, #tpu.memory_space<vmem>>, %arg6: memref<128x128xbf16, #tpu.memory_space<vmem>>, %arg7: memref<1x128xf32, #tpu.memory_space<vmem>>, %arg8: memref<8x128xf32, #tpu.memory_space<vmem>>) attributes {dimension_semantics = [#tpu.dimension_semantics<parallel>], iteration_bounds = array<i64: 1>, scalar_prefetch = 0 : i64, scratch_operands = 0 : i64, tpu.core_type = #tpu.core_type<tc>, window_params = [{transform_indices = @transform_0, window_bounds = array<i64: 8, 64>}, {pipeline_mode = #tpu.pipeline_mode<synchronous>, transform_indices = @transform_1, window_bounds = array<i64: 64, 128>}, {pipeline_mode = #tpu.pipeline_mode<synchronous>, transform_indices = @transform_2, window_bounds = array<i64: 1, 128>}, {pipeline_mode = #tpu.pipeline_mode<synchronous>, transform_indices = @transform_3, window_bounds = array<i64: 128, 128>}, {pipeline_mode = #tpu.pipeline_mode<synchronous>, transform_indices = @transform_4, window_bounds = array<i64: 1, 128>}, {pipeline_mode = #tpu.pipeline_mode<synchronous>, transform_indices = @transform_5, window_bounds = array<i64: 128, 128>}, {pipeline_mode = #tpu.pipeline_mode<synchronous>, transform_indices = @transform_6, window_bounds = array<i64: 1, 128>}, {transform_indices = @transform_7, window_bounds = array<i64: 8, 128>}]} {
    %c0 = arith.constant 0 : index
    %c0_0 = arith.constant 0 : index
    %0 = vector.load %arg1[%c0, %c0_0] : memref<8x64xbf16, #tpu.memory_space<vmem>>, vector<8x64xbf16>
    %c0_1 = arith.constant 0 : index
    %c0_2 = arith.constant 0 : index
    %1 = vector.load %arg2[%c0_1, %c0_2] : memref<64x128xbf16, #tpu.memory_space<vmem>>, vector<64x128xbf16>
    %cst = arith.constant dense<0.000000e+00> : vector<8x128xf32>
    %2 = tpu.matmul %0, %1, %cst {dimension_numbers = #tpu.dot_dimension_numbers<[1], [0], [0], [1], [0, 0, 1, 1], [], []>} : vector<8x64xbf16>, vector<64x128xbf16>, vector<8x128xf32> -> vector<8x128xf32>
    %c0_3 = arith.constant 0 : index
    %c0_4 = arith.constant 0 : index
    %3 = vector.load %arg3[%c0_3, %c0_4] : memref<1x128xf32, #tpu.memory_space<vmem>>, vector<1x128xf32>
    %4 = vector.broadcast %3 : vector<1x128xf32> to vector<8x128xf32>
    %5 = arith.addf %2, %4 : vector<8x128xf32>
    %cst_5 = arith.constant 0.000000e+00 : f32
    %6 = vector.broadcast %cst_5 : f32 to vector<8x128xf32>
    %7 = arith.maximumf %5, %6 : vector<8x128xf32>
    %8 = arith.truncf %7 : vector<8x128xf32> to vector<8x128xbf16>
    %c0_6 = arith.constant 0 : index
    %c0_7 = arith.constant 0 : index
    %9 = vector.load %arg4[%c0_6, %c0_7] : memref<128x128xbf16, #tpu.memory_space<vmem>>, vector<128x128xbf16>
    %cst_8 = arith.constant dense<0.000000e+00> : vector<8x128xf32>
    %10 = tpu.matmul %8, %9, %cst_8 {dimension_numbers = #tpu.dot_dimension_numbers<[1], [0], [0], [1], [0, 0, 1, 1], [], []>} : vector<8x128xbf16>, vector<128x128xbf16>, vector<8x128xf32> -> vector<8x128xf32>
    %c0_9 = arith.constant 0 : index
    %c0_10 = arith.constant 0 : index
    %11 = vector.load %arg5[%c0_9, %c0_10] : memref<1x128xf32, #tpu.memory_space<vmem>>, vector<1x128xf32>
    %12 = vector.broadcast %11 : vector<1x128xf32> to vector<8x128xf32>
    %13 = arith.addf %10, %12 : vector<8x128xf32>
    %cst_11 = arith.constant 0.000000e+00 : f32
    %14 = vector.broadcast %cst_11 : f32 to vector<8x128xf32>
    %15 = arith.maximumf %13, %14 : vector<8x128xf32>
    %16 = arith.truncf %15 : vector<8x128xf32> to vector<8x128xbf16>
    %c0_12 = arith.constant 0 : index
    %c0_13 = arith.constant 0 : index
    %17 = vector.load %arg6[%c0_12, %c0_13] : memref<128x128xbf16, #tpu.memory_space<vmem>>, vector<128x128xbf16>
    %cst_14 = arith.constant dense<0.000000e+00> : vector<8x128xf32>
    %18 = tpu.matmul %16, %17, %cst_14 {dimension_numbers = #tpu.dot_dimension_numbers<[1], [0], [0], [1], [0, 0, 1, 1], [], []>} : vector<8x128xbf16>, vector<128x128xbf16>, vector<8x128xf32> -> vector<8x128xf32>
    %c0_15 = arith.constant 0 : index
    %c0_16 = arith.constant 0 : index
    %19 = vector.load %arg7[%c0_15, %c0_16] : memref<1x128xf32, #tpu.memory_space<vmem>>, vector<1x128xf32>
    %20 = vector.broadcast %19 : vector<1x128xf32> to vector<8x128xf32>
    %21 = arith.addf %18, %20 : vector<8x128xf32>
    %cst_17 = arith.constant dense<0xFF800000> : vector<8xf32>
    %22 = vector.multi_reduction <maximumf>, %21, %cst_17 [1] : vector<8x128xf32> to vector<8xf32>
    %23 = vector.shape_cast %22 : vector<8xf32> to vector<8x1xf32>
    %24 = vector.broadcast %23 : vector<8x1xf32> to vector<8x128xf32>
    %25 = arith.subf %21, %24 : vector<8x128xf32>
    %26 = math.exp %25 : vector<8x128xf32>
    %cst_18 = arith.constant dense<0.000000e+00> : vector<8xf32>
    %27 = vector.multi_reduction <add>, %26, %cst_18 [1] : vector<8x128xf32> to vector<8xf32>
    %28 = vector.shape_cast %27 : vector<8xf32> to vector<8x1xf32>
    %29 = math.log %28 : vector<8x1xf32>
    %30 = vector.broadcast %29 : vector<8x1xf32> to vector<8x128xf32>
    %31 = arith.subf %25, %30 : vector<8x128xf32>
    %c0_19 = arith.constant 0 : index
    %c0_20 = arith.constant 0 : index
    %32 = vector.load %arg8[%c0_19, %c0_20] : memref<8x128xf32, #tpu.memory_space<vmem>>, vector<8x128xf32>
    tpu.vector_store %arg8[%c0_19, %c0_20], %31 {strides = array<i32>} : memref<8x128xf32, #tpu.memory_space<vmem>>, vector<8x128xf32>,
    return
  }
  func.func @transform_0(%arg0: i32) -> (i32, i32) {
    %c0_i32 = arith.constant 0 : i32
    %c0_i32_0 = arith.constant 0 : i32
    return %arg0, %c0_i32 : i32, i32
  }
  func.func @transform_1(%arg0: i32) -> (i32, i32) {
    %c0_i32 = arith.constant 0 : i32
    %c0_i32_0 = arith.constant 0 : i32
    %c0_i32_1 = arith.constant 0 : i32
    return %c0_i32, %c0_i32_0 : i32, i32
  }
  func.func @transform_2(%arg0: i32) -> (i32, i32) {
    %c0_i32 = arith.constant 0 : i32
    %c0_i32_0 = arith.constant 0 : i32
    %c0_i32_1 = arith.constant 0 : i32
    return %c0_i32, %c0_i32_0 : i32, i32
  }
  func.func @transform_3(%arg0: i32) -> (i32, i32) {
    %c0_i32 = arith.constant 0 : i32
    %c0_i32_0 = arith.constant 0 : i32
    %c0_i32_1 = arith.constant 0 : i32
    return %c0_i32, %c0_i32_0 : i32, i32
  }
  func.func @transform_4(%arg0: i32) -> (i32, i32) {
    %c0_i32 = arith.constant 0 : i32
    %c0_i32_0 = arith.constant 0 : i32
    %c0_i32_1 = arith.constant 0 : i32
    return %c0_i32, %c0_i32_0 : i32, i32
  }
  func.func @transform_5(%arg0: i32) -> (i32, i32) {
    %c0_i32 = arith.constant 0 : i32
    %c0_i32_0 = arith.constant 0 : i32
    %c0_i32_1 = arith.constant 0 : i32
    return %c0_i32, %c0_i32_0 : i32, i32
  }
  func.func @transform_6(%arg0: i32) -> (i32, i32) {
    %c0_i32 = arith.constant 0 : i32
    %c0_i32_0 = arith.constant 0 : i32
    %c0_i32_1 = arith.constant 0 : i32
    return %c0_i32, %c0_i32_0 : i32, i32
  }
  func.func @transform_7(%arg0: i32) -> (i32, i32) {
    %c0_i32 = arith.constant 0 : i32
    %c0_i32_0 = arith.constant 0 : i32
    return %arg0, %c0_i32 : i32, i32
  }
}

</mosaic_0001>

<bundles_post_ra>
// kernel: tpu_custom_call.1
= control target key start
LH: loop header
LB: loop body
LE: loop exit
PB: predicated region body
PF: predicated region fallthrough
CT: control target
= control target key end

     0   :  { %12 = vsyncpa [#allocation3], 0  ;;  %s822_s0 = inlined_call_operand.hbm [shape: bf16[8,64], index: 0, kind: input, shape index: {}]   ;;  %s823_s1 = inlined_call_operand.hbm [shape: bf16[64,128], index: 1, kind: input, shape index: {}]   ;;  %s824_s2 = inlined_call_operand.vmem [shape: f32[1,128], index: 2, kind: input, shape index: {}]   ;;  %s825_s3 = inlined_call_operand.hbm [shape: bf16[128,128], index: 3, kind: input, shape index: {}]   ;;  %s826_s4 = inlined_call_operand.vmem [shape: f32[1,128], index: 4, kind: input, shape index: {}]   ;;  %s827_s5 = inlined_call_operand.hbm [shape: bf16[128,128], index: 5, kind: input, shape index: {}]   ;;  %s828_s6 = inlined_call_operand.vmem [shape: f32[1,128], index: 6, kind: input, shape index: {}]   ;;  %s829_s7 = inlined_call_operand.hbm [shape: f32[8,128], index: 7, kind: output, shape index: {}]  }
   0x1   :  { %13 = vsyncpa [#allocation6], 0 }
   0x2   :  { %14 = vsyncpa [#allocation9], 0 }
   0x3   :  { %15 = vsyncpa [#allocation4], 0  ;;  %s669_s24 = smov [#allocation5]   ;;  %s551_s28 = scalar_lea.hbm %s823_s1, 512 }
   0x4   :  { %s31_s25 = sshll.u32 %s669_s24, 4  ;;  %p552_p0 = scmp.ne.s32.totalorder %s823_s1, %s551_s28  ;;  %s32_s25 = int_to_ptr.vmem [resolvable:$true] %s31_s25 }
   0x5   :  { %p555_p1 = scmp.lt.u32.totalorder %s551_s28, %s823_s1 }
   0x7   :  { %p557_p2 = pnand %p555_p1, %p552_p0 }
   0x9   :  { %560 = shalt.err (!%p557_p2)
}
   0xa   :  { %s561_s10 = scalar_lea.vmem %s32_s25, 512  ;;  %p566_p4 = scmp.lt.s32.totalorder %s32_s25, %s32_s25 }
   0xb   :  { %p562_p3 = scmp.ne.s32.totalorder %s32_s25, %s561_s10  ;;  %p567_p5 = scmp.lt.s32.totalorder %s561_s10, %s561_s10 }
   0xd   :  { %p568_p6 = por %p567_p5, %p566_p4 }
   0xf   :  { %p569_p7 = pnand %p568_p6, %p562_p3 }
  0x11   :  { %572 = shalt.err (!%p569_p7)
}
  0x12   :  { %s670_s11 = smov 64   ;;  %s671_s12 = smov 4  }
  0x13   :  { %37 = dma.hbm_to_vmem [thread:$0]  %s823_s1, 512, %s32_s25, [#allocation6], %s670_s11, %s670_s11, %s671_s12  }
  0x14   :  { %s672_s15 = smov [#allocation2]   ;;  %s673_s17 = smov [#allocation7]  }
  0x15   :  { %s22_s16 = sshll.u32 %s672_s15, 4  ;;  %s45_s18 = sshll.u32 %s673_s17, 4  ;;  %s23_s16 = int_to_ptr.vmem [resolvable:$true] %s22_s16  ;;  %s46_s18 = int_to_ptr.vmem [resolvable:$true] %s45_s18 }
  0x16   :  { %s573_s21 = scalar_lea.hbm %s822_s0, 64 }
  0x17   :  { %p574_p8 = scmp.ne.s32.totalorder %s822_s0, %s573_s21  ;;  %p577_p9 = scmp.lt.u32.totalorder %s573_s21, %s822_s0 }
  0x19   :  { %p579_p10 = pnand %p577_p9, %p574_p8 }
  0x1b   :  { %582 = shalt.err (!%p579_p10)
}
  0x1c   :  { %s583_s1 = scalar_lea.vmem %s23_s16, 64  ;;  %p588_p12 = scmp.lt.s32.totalorder %s23_s16, %s23_s16 }
  0x1d   :  { %p584_p11 = scmp.ne.s32.totalorder %s23_s16, %s583_s1  ;;  %p589_p13 = scmp.lt.s32.totalorder %s583_s1, %s583_s1 }
  0x1f   :  { %p590_p0 = por %p589_p13, %p588_p12 }
  0x21   :  { %p591_p1 = pnand %p590_p0, %p584_p11 }
  0x23   :  { %594 = shalt.err (!%p591_p1)
}
  0x24   :  { %25 = dma.hbm_to_vmem [thread:$0]  %s822_s0, 64, %s23_s16, [#allocation3]  }
  0x25   :  { %s595_s30 = scalar_lea.hbm %s825_s3, 1024 }
  0x26   :  { %p596_p2 = scmp.ne.s32.totalorder %s825_s3, %s595_s30  ;;  %p599_p3 = scmp.lt.u32.totalorder %s595_s30, %s825_s3 }
  0x28   :  { %p601_p4 = pnand %p599_p3, %p596_p2 }
  0x2a   :  { %604 = shalt.err (!%p601_p4)
}
  0x2b   :  { %s605_s14 = scalar_lea.vmem %s46_s18, 1024  ;;  %p610_p6 = scmp.lt.s32.totalorder %s46_s18, %s46_s18 }
  0x2c   :  { %p606_p5 = scmp.ne.s32.totalorder %s46_s18, %s605_s14  ;;  %p611_p7 = scmp.lt.s32.totalorder %s605_s14, %s605_s14 }
  0x2e   :  { %p612_p8 = por %p611_p7, %p610_p6 }
  0x30   :  { %p613_p9 = pnand %p612_p8, %p606_p5 }
  0x32   :  { %616 = shalt.err (!%p613_p9)
}
  0x33   :  { %51 = dma.hbm_to_vmem [thread:$0]  %s825_s3, 1024, %s46_s18, [#allocation6], %s670_s11, %s670_s11, %s671_s12  }
  0x34   :  { %s674_s16 = smov [#allocation8]   ;;  %s617_s21 = scalar_lea.hbm %s827_s5, 1024 }
  0x35   :  { %s59_s17 = sshll.u32 %s674_s16, 4  ;;  %p618_p10 = scmp.ne.s32.totalorder %s827_s5, %s617_s21  ;;  %s60_s17 = int_to_ptr.vmem [resolvable:$true] %s59_s17 }
  0x36   :  { %p621_p11 = scmp.lt.u32.totalorder %s617_s21, %s827_s5 }
  0x38   :  { %p623_p12 = pnand %p621_p11, %p618_p10 }
  0x3a   :  { %626 = shalt.err (!%p623_p12)
}
  0x3b   :  { %s627_s1 = scalar_lea.vmem %s60_s17, 1024  ;;  %p632_p0 = scmp.lt.s32.totalorder %s60_s17, %s60_s17 }
  0x3c   :  { %p628_p13 = scmp.ne.s32.totalorder %s60_s17, %s627_s1  ;;  %p633_p1 = scmp.lt.s32.totalorder %s627_s1, %s627_s1 }
  0x3e   :  { %p634_p2 = por %p633_p1, %p632_p0 }
  0x40   :  { %p635_p3 = pnand %p634_p2, %p628_p13 }
  0x42   :  { %638 = shalt.err (!%p635_p3)
}
  0x43   :  { %65 = dma.hbm_to_vmem [thread:$0]  %s827_s5, 1024, %s60_s17, [#allocation9], %s670_s11, %s670_s11, %s671_s12  }
  0x44   :  { %661 = dma.done.wait [#allocation3], 64  }
  0x45   :  { %662 = vsyncadd [#allocation3], 4294967232 }
  0x46   :  { %663 = dma.done.wait [#allocation6], 1536  }
  0x47   :  { %664 = vsyncadd [#allocation6], 4294965760 }
  0x48   :  { %665 = dma.done.wait [#allocation9], 1024  }
  0x49   :  { %666 = vsyncadd [#allocation9], 4294966272  ;;  %v675_v0 = vmov 0.0   ;;  %vm676_vm0 = vmmov 0   ;;  %v527_v1 = vld [vmem:[#allocation5] sm:$0xff]   ;;  %v528_v2 = vld [vmem:[#allocation5 + $0x8] sm:$0xff]  }
  0x4a   :  { %466 = vmatprep.subr.bf16.mxu0 %v675_v0  ;;  %474 = vmatprep.mubr.msk.bf16.mxu0 %vm676_vm0, %v675_v0  ;;  %v531_v3 = vld [vmem:[#allocation7] sm:$0xff]   ;;  %v529_v4 = vld [vmem:[#allocation5 + $0x10] sm:$0xff]   ;;  %v532_v5 = vld [vmem:[#allocation7 + $0x8] sm:$0xff]   ;;  %vm121_vm1 = vcmask 523264  }
  0x4b   :  { %478 = vmatprep.subr.bf16.mxu1 %v675_v0  ;;  %494 = vmatprep.mubr.msk.bf16.mxu1 %vm676_vm0, %v675_v0  ;;  %v530_v6 = vld [vmem:[#allocation5 + $0x18] sm:$0xff]   ;;  %v533_v7 = vld [vmem:[#allocation7 + $0x10] sm:$0xff]   ;;  %v535_v10 = vld [vmem:[#allocation7 + $0x20] sm:$0xff]  }
  0x4c   :  { %467 = vmatpush3.bf16.msra.mxu0 %v527_v1  ;;  %479 = vmatpush3.bf16.msra.mxu1 %v531_v3  ;;  %v81_v8 = vld [vmem:[#allocation2] sm:$0xf]  ;;  %v536_v11 = vld [vmem:[#allocation7 + $0x28] sm:$0xff]   ;;  %v537_v12 = vld [vmem:[#allocation7 + $0x30] sm:$0xff]  }
  0x4d   :  { %468 = vmatprep.subr.bf16.mxu0 %v675_v0  ;;  %480 = vmatprep.subr.bf16.mxu1 %v675_v0  ;;  %v534_v9 = vld [vmem:[#allocation7 + $0x18] sm:$0xff]   ;;  %v539_v14 = vld [vmem:[#allocation8] sm:$0xff]   ;;  %v540_v15 = vld [vmem:[#allocation8 + $0x8] sm:$0xff]  }
  0x4e   :  { %v538_v13 = vld [vmem:[#allocation7 + $0x38] sm:$0xff]   ;;  %v541_v16 = vld [vmem:[#allocation8 + $0x10] sm:$0xff]   ;;  %v543_v18 = vld [vmem:[#allocation8 + $0x20] sm:$0xff]  }
  0x4f   :  { %v542_v17 = vld [vmem:[#allocation8 + $0x18] sm:$0xff]   ;;  %v544_v19 = vld [vmem:[#allocation8 + $0x28] sm:$0xff]   ;;  %v545_v28 = vld [vmem:[#allocation8 + $0x30] sm:$0xff]  }
  0x50   :  { %469 = vmatpush3.bf16.msra.mxu0 %v528_v2  ;;  %481 = vmatpush3.bf16.msra.mxu1 %v532_v5  ;;  %v419_v20 = vld [vmem:[%s824_s2] ss:$0 sm:$0xff] }
  0x51   :  { %470 = vmatprep.subr.bf16.mxu0 %v675_v0  ;;  %482 = vmatprep.subr.bf16.mxu1 %v675_v0  ;;  %v546_v29 = vld [vmem:[#allocation8 + $0x38] sm:$0xff]  }
  0x52   :  { %v425_v30 = vld [vmem:[%s826_s4] ss:$0 sm:$0xff]  ;;  %s677_s4 = smov [#allocation10]  }
  0x53   :  { %v434_v38 = vld [vmem:[%s828_s6] ss:$0 sm:$0xff]  ;;  %s408_s28 = sshll.u32 %s677_s4, 4  ;;  %s409_s28 = int_to_ptr.vmem [resolvable:$true] %s408_s28 }
  0x54   :  { %471 = vmatpush3.bf16.msra.mxu0 %v529_v4  ;;  %483 = vmatpush3.bf16.msra.mxu1 %v533_v7  ;;  %s639_s6 = scalar_lea.vmem %s409_s28, 128  ;;  %p644_p5 = scmp.lt.s32.totalorder %s409_s28, %s409_s28 }
  0x55   :  { %472 = vmatprep.subr.bf16.mxu0 %v675_v0  ;;  %484 = vmatprep.subr.bf16.mxu1 %v675_v0  ;;  %p640_p4 = scmp.ne.s32.totalorder %s409_s28, %s639_s6  ;;  %p645_p6 = scmp.lt.s32.totalorder %s639_s6, %s639_s6 }
  0x57   :  { %p646_p7 = por %p645_p6, %p644_p5 }
  0x58   :  { %473 = vmatpush3.bf16.msra.mxu0 %v530_v6  ;;  %485 = vmatpush3.bf16.msra.mxu1 %v534_v9 }
  0x59   :  { %498 = vmatprep.subr.bf16.mxu0 %v675_v0  ;;  %486 = vmatprep.subr.bf16.mxu1 %v675_v0  ;;  %p647_p8 = pnand %p646_p7, %p640_p4 }
  0x5b   :  { %475 = vmatmul.mubr.msk.bf16.vlgmr.msra.gmra.mrb[0].mxu0 %vm121_vm1, %v81_v8 }
  0x5c   :  { %514 = vmatprep.mubr.msk.bf16.mxu0 %vm676_vm0, %v675_v0  ;;  %487 = vmatpush3.bf16.msra.mxu1 %v535_v10 }
  0x5d   :  { %488 = vmatprep.subr.bf16.mxu1 %v675_v0  ;;  %499 = vmatpush3.bf16.msra.mxu0 %v539_v14 }
  0x5e   :  { %500 = vmatprep.subr.bf16.mxu0 %v675_v0 }
  0x60   :  { %489 = vmatpush3.bf16.msra.mxu1 %v536_v11 }
  0x61   :  { %490 = vmatprep.subr.bf16.mxu1 %v675_v0  ;;  %501 = vmatpush3.bf16.msra.mxu0 %v540_v15 }
  0x62   :  { %502 = vmatprep.subr.bf16.mxu0 %v675_v0 }
  0x64   :  { %491 = vmatpush3.bf16.msra.mxu1 %v537_v12 }
  0x65   :  { %492 = vmatprep.subr.bf16.mxu1 %v675_v0  ;;  %503 = vmatpush3.bf16.msra.mxu0 %v541_v16 }
  0x66   :  { %504 = vmatprep.subr.bf16.mxu0 %v675_v0 }
  0x68   :  { %493 = vmatpush3.bf16.msra.mxu1 %v538_v13 }
  0x69   :  { %505 = vmatpush3.bf16.msra.mxu0 %v542_v17 }
  0x6a   :  { %506 = vmatprep.subr.bf16.mxu0 %v675_v0 }
  0x6d   :  { %507 = vmatpush3.bf16.msra.mxu0 %v543_v18 }
  0x6e   :  { %508 = vmatprep.subr.bf16.mxu0 %v675_v0 }
  0x71   :  { %509 = vmatpush3.bf16.msra.mxu0 %v544_v19 }
  0x72   :  { %510 = vmatprep.subr.bf16.mxu0 %v675_v0 }
  0x75   :  { %511 = vmatpush3.bf16.msra.mxu0 %v545_v28 }
  0x76   :  { %512 = vmatprep.subr.bf16.mxu0 %v675_v0 }
  0x79   :  { %513 = vmatpush3.bf16.msra.mxu0 %v546_v29 }
 0x12e   :  { %v159_v21 = vpop.f32.mrb[0].mxu0 }
 0x12f   :  { %v160_v22 = vadd.f32 %v419_v20, %v159_v21  ;;  %v476_v23 = vpop.f32.mrb[1].mxu0 }
 0x130   :  { %v162_v24 = vpop.f32.mrb[2].mxu0 }
 0x131   :  { %v165_v25 = vmax.f32 %v160_v22, 0.0  ;;  %v477_v26 = vpop.f32.mrb[3].mxu0 }
 0x133   :  { %v166_v27 = vpack.c.bf16 %v165_v25, %v165_v25 }
 0x135   :  { %495 = vmatmul.mubr.bf16.vlgmr.msra.gmra.mrb[0].mxu1 %v166_v27 }
 0x208   :  { %v272_v31 = vpop.f32.mrb[0].mxu1 }
 0x209   :  { %v273_v32 = vadd.f32 %v425_v30, %v272_v31  ;;  %v496_v33 = vpop.f32.mrb[1].mxu1 }
 0x20a   :  { %v275_v34 = vpop.f32.mrb[2].mxu1 }
 0x20b   :  { %v278_v35 = vmax.f32 %v273_v32, 0.0  ;;  %v497_v36 = vpop.f32.mrb[3].mxu1 }
 0x20d   :  { %v279_v37 = vpack.c.bf16 %v278_v35, %v278_v35 }
 0x20f   :  { %515 = vmatmul.mubr.bf16.vlgmr.msra.gmra.mrb[4].mxu0 %v279_v37 }
 0x2e2   :  { %v385_v39 = vpop.f32.mrb[4].mxu0 }
 0x2e3   :  { %v386_v40 = vadd.f32 %v434_v38, %v385_v39  ;;  %v516_v41 = vpop.f32.mrb[5].mxu0 }
 0x2e4   :  { %v388_v42 = vpop.f32.mrb[6].mxu0 }
 0x2e5   :  { %391 = vmax.xlane.f32.xlu0 %v386_v40  ;;  %v517_v43 = vpop.f32.mrb[7].mxu0 }
 0x372   :  { %v392_v44 = vpop.xlane.xlu0 %391 }
 0x373   :  { %v393_v45 = vsub.f32 %v386_v40, %v392_v44 }
 0x375   :  { %v394_v46 = vmul.f32 1.442695, %v393_v45 }
 0x377   :  { %547 = vpow2.f32 %v394_v46 }
 0x381   :  { %v548_v47 = vpop.eup %547 }
 0x382   :  { %396 = vadd.xlane.f32.xlu0 %v548_v47 }
 0x40f   :  { %v397_v48 = vpop.xlane.xlu0 %396 }
 0x410   :  { %549 = vlog2.f32 %v397_v48 }
 0x41a   :  { %v550_v49 = vpop.eup %549 }
 0x41b   :  { %v399_v50 = vmul.f32 0.6931472, %v550_v49 }
 0x41d   :  { %v400_v51 = vsub.f32 %v393_v45, %v399_v50 }
 0x41f   :  { %401 = vst [vmem:[#allocation10] sm:$0xff] %v400_v51 }
 0x420   :  { %650 = shalt.err (!%p647_p8)
}
 0x421   :  { %s651_s8 = scalar_lea.hbm %s829_s7, 128 }
 0x422   :  { %p652_p9 = scmp.ne.s32.totalorder %s829_s7, %s651_s8  ;;  %p655_p10 = scmp.lt.u32.totalorder %s651_s8, %s829_s7 }
 0x424   :  { %p657_p11 = pnand %p655_p10, %p652_p9 }
 0x426   :  { %660 = shalt.err (!%p657_p11)
}
 0x427   :  { %411 = dma.vmem_to_hbm [thread:$0]  %s409_s28, 128, %s829_s7, [#allocation4]  }
 0x428   :  { %667 = dma.done.wait [#allocation4], 128  }
 0x429   :  { %668 = vsyncadd [#allocation4], 4294967168 }
 0x42a   :  { %415 = vsyncpa [#allocation3], 1 }
 0x42b   :  { %416 = vsyncpa [#allocation6], 1 }
 0x42c   :  { %417 = vsyncpa [#allocation9], 1 }
 0x42d   :  { %418 = vsyncpa [#allocation4], 1 }

</bundles_post_ra>
